<compile_context>
chip_gen: v7x
topology: tpu7x:2x2x1
jax: 0.10.0
libtpu: 0.0.40
codegen_flags: <defaults>
</compile_context>

<pallas_src>
import functools

import jax
import jax.numpy as jnp
from jax.experimental import pallas as pl
from jax.experimental.pallas import tpu as pltpu

_LANES = 128
_CHUNK_ROWS = 512        # (512,128) f32 chunk -> ~256 KiB live temp per operand
_MAX_BLOCK_ROWS = 8192   # (8192,128) f32 -> 4 MiB streamed per input per grid step
_SMOOTH = 1e-5


def _round_up(x, m):
    return ((x + m - 1) // m) * m


def _sublane_multiple(dtype):
    # native-dtype tiles pack along sublanes: f32 -> 8, bf16 -> 16, int8 -> 32
    return max(8, 32 // jnp.dtype(dtype).itemsize)


def _dice_partials_kernel(pred_ref, tgt_ref, out_ref, *,
                          rows, block_rows, chunk_rows, ragged):
    """Per-tile partial sums: out_ref[0,0] = sum_partial(pt*t), out_ref[0,1] = sum_partial(pt+t)."""
    num_chunks = block_rows // chunk_rows

    def accumulate(masked):
        inter = jnp.zeros((8, _LANES), jnp.float32)
        union = jnp.zeros((8, _LANES), jnp.float32)
        for c in range(num_chunks):            # static, fully-unrolled chunk walk
            r0 = c * chunk_rows
            p = pred_ref[pl.ds(r0, chunk_rows), :].astype(jnp.float32)
            t = tgt_ref[pl.ds(r0, chunk_rows), :].astype(jnp.float32)
            pt = jax.nn.sigmoid(p)
            if masked:
                # Row-only validity compare (int32-safe); garbage boundary-padding rows
                # are replaced (not multiplied) so NaN/Inf garbage cannot leak.
                row_ids = jax.lax.broadcasted_iota(
                    jnp.int32, (chunk_rows, _LANES), 0)
                global_rows = pl.program_id(0) * block_rows + r0 + row_ids
                valid = global_rows < rows
                pt = jnp.where(valid, pt, 0.0)
                t = jnp.where(valid, t, 0.0)
            prod = (pt * t).reshape(chunk_rows // 8, 8, _LANES)
            both = (pt + t).reshape(chunk_rows // 8, 8, _LANES)
            inter = inter + jnp.sum(prod, axis=0)
            union = union + jnp.sum(both, axis=0)
        out_ref[0, 0] = inter
        out_ref[0, 1] = union

    if ragged:
        last = pl.num_programs(0) - 1

        @pl.when(pl.program_id(0) < last)
        def _():
            accumulate(masked=False)

        @pl.when(pl.program_id(0) == last)
        def _():
            accumulate(masked=True)
    else:
        accumulate(masked=False)


def bce_focal_loss(predict, target, gamma=2, alpha=0.25, reduction="mean"):
    """Pallas implementation of BCEFocalLoss.forward (gamma/alpha/reduction are unused
    by the PyTorch forward; kept for signature parity)."""
    del gamma, alpha, reduction

    total = predict.size
    pred_flat = predict.reshape(-1)   # reshape of a contiguous array is free
    tgt_flat = target.reshape(-1)

    rows = total // _LANES
    rem = total - rows * _LANES

    intersection = jnp.float32(0.0)
    unionset = jnp.float32(0.0)

    if rows:
        main = rows * _LANES
        if rem:
            # Process only the 128-aligned prefix in the kernel; the <=127-element tail
            # is handled below in the wrapper (no full-tensor pad copy).
            pred2d = pred_flat[:main].reshape(rows, _LANES)
            tgt2d = tgt_flat[:main].reshape(rows, _LANES)
        else:
            pred2d = pred_flat.reshape(rows, _LANES)
            tgt2d = tgt_flat.reshape(rows, _LANES)

        sub = max(_sublane_multiple(pred2d.dtype), _sublane_multiple(tgt2d.dtype))

        # Aim for >= 2 grid steps (so v7x megacore has work for both TCs), each as big
        # as possible up to _MAX_BLOCK_ROWS, and a multiple of the chunk granularity.
        block_rows = _round_up(pl.cdiv(rows, 2), sub)
        if block_rows > _CHUNK_ROWS:
            block_rows = _round_up(block_rows, _CHUNK_ROWS)
        block_rows = min(block_rows, _MAX_BLOCK_ROWS)
        chunk_rows = min(_CHUNK_ROWS, block_rows)
        num_tiles = pl.cdiv(rows, block_rows)
        # Mask only when the last tile contains Pallas boundary-padding rows.
        ragged = (num_tiles * block_rows) != rows

        kernel = functools.partial(
            _dice_partials_kernel,
            rows=rows, block_rows=block_rows, chunk_rows=chunk_rows, ragged=ragged)

        # 2 pipeline buffers per input + headroom for in-kernel temporaries/outputs.
        in_buf_bytes = 2 * block_rows * _LANES * (
            jnp.dtype(pred2d.dtype).itemsize + jnp.dtype(tgt2d.dtype).itemsize)
        vmem_limit = min(in_buf_bytes + (8 << 20), 48 << 20)

        partials = pl.pallas_call(
            kernel,
            out_shape=jax.ShapeDtypeStruct((num_tiles, 2, 8, _LANES), jnp.float32),
            grid_spec=pltpu.PrefetchScalarGridSpec(
                num_scalar_prefetch=0,
                grid=(num_tiles,),
                in_specs=[
                    pl.BlockSpec((block_rows, _LANES), lambda i: (i, 0)),
                    pl.BlockSpec((block_rows, _LANES), lambda i: (i, 0)),
                ],
                out_specs=pl.BlockSpec((1, 2, 8, _LANES), lambda i: (i, 0, 0, 0)),
            ),
            compiler_params=pltpu.CompilerParams(
                # Each grid step writes its own output block -> independent -> safe to
                # shard across both TensorCores on v7x (no-op on v5e/v6e).
                dimension_semantics=("parallel",),
                vmem_limit_bytes=int(vmem_limit),
            ),
        )(pred2d, tgt2d)

        # Tiny final combine (XLA tree-reduces -> good f32 accuracy for huge tensors).
        sums = jnp.sum(partials, axis=(0, 2, 3))   # (2,)
        intersection = sums[0]
        unionset = sums[1]

    if rem:
        # <=127-element flat tail, summed directly in the wrapper.
        p_tail = jax.nn.sigmoid(pred_flat[rows * _LANES:].astype(jnp.float32))
        t_tail = tgt_flat[rows * _LANES:].astype(jnp.float32)
        intersection = intersection + jnp.sum(p_tail * t_tail)
        unionset = unionset + jnp.sum(p_tail) + jnp.sum(t_tail)

    l = 2.0 * (intersection + _SMOOTH) / (unionset + _SMOOTH)
    return 1.0 - l


def _reference_loss(predict, target):
    pt = jax.nn.sigmoid(predict.astype(jnp.float32))
    pred_flat = pt.reshape(-1)
    gt_flat = target.reshape(-1).astype(jnp.float32)
    intersection = jnp.sum(pred_flat * gt_flat)
    unionset = jnp.sum(pred_flat) + jnp.sum(gt_flat)
    l = 2.0 * (intersection + _SMOOTH) / (unionset + _SMOOTH)
    return 1.0 - l


if __name__ == "__main__":
    key = jax.random.PRNGKey(0)
    k1, k2 = jax.random.split(key)

    # NCHW inputs, consistent with a segmentation-style logits/mask pair.
    predict = jax.random.normal(k1, (2, 4, 16, 16), dtype=jnp.float32)
    target = (jax.random.uniform(k2, (2, 4, 16, 16)) > 0.5).astype(jnp.float32)

    loss = jax.block_until_ready(bce_focal_loss(predict, target))
    ref = jax.block_until_ready(_reference_loss(predict, target))
    assert jnp.allclose(loss, ref, atol=1e-5, rtol=1e-5), (loss, ref)

    print("KERNEL_OK")
</pallas_src>

<mosaic_0001>
module attributes {stable_mosaic.version = 11 : i64} {
  func.func @_dice_partials_kernel(%arg0: i32, %arg1: memref<8x128xf32, #tpu.memory_space<vmem>>, %arg2: memref<8x128xf32, #tpu.memory_space<vmem>>, %arg3: memref<1x2x8x128xf32, #tpu.memory_space<vmem>>) attributes {dimension_semantics = [#tpu.dimension_semantics<parallel>], iteration_bounds = array<i64: 2>, scalar_prefetch = 0 : i64, scratch_operands = 0 : i64, tpu.core_type = #tpu.core_type<tc>, window_params = [{transform_indices = @transform_0, window_bounds = array<i64: 8, 128>}, {transform_indices = @transform_1, window_bounds = array<i64: 8, 128>}, {transform_indices = @transform_2, window_bounds = array<i64: 1, 2, 8, 128>}]} {
    %cst = arith.constant 0.000000e+00 : f32
    %0 = vector.broadcast %cst : f32 to vector<8x128xf32>
    %cst_0 = arith.constant 0.000000e+00 : f32
    %1 = vector.broadcast %cst_0 : f32 to vector<8x128xf32>
    %c0 = arith.constant 0 : index
    %c0_1 = arith.constant 0 : index
    %2 = vector.load %arg1[%c0, %c0_1] : memref<8x128xf32, #tpu.memory_space<vmem>>, vector<8x128xf32>
    %c0_2 = arith.constant 0 : index
    %c0_3 = arith.constant 0 : index
    %3 = vector.load %arg2[%c0_2, %c0_3] : memref<8x128xf32, #tpu.memory_space<vmem>>, vector<8x128xf32>
    %4 = arith.negf %2 : vector<8x128xf32>
    %5 = math.exp %4 : vector<8x128xf32>
    %cst_4 = arith.constant 1.000000e+00 : f32
    %6 = vector.broadcast %cst_4 : f32 to vector<8x128xf32>
    %7 = arith.addf %6, %5 : vector<8x128xf32>
    %8 = arith.divf %6, %7 : vector<8x128xf32>
    %9 = arith.mulf %8, %3 : vector<8x128xf32>
    %10 = vector.shape_cast %9 : vector<8x128xf32> to vector<1x8x128xf32>
    %11 = arith.addf %8, %3 : vector<8x128xf32>
    %12 = vector.shape_cast %11 : vector<8x128xf32> to vector<1x8x128xf32>
    %cst_5 = arith.constant dense<0.000000e+00> : vector<8x128xf32>
    %13 = vector.multi_reduction <add>, %10, %cst_5 [0] : vector<1x8x128xf32> to vector<8x128xf32>
    %14 = arith.addf %0, %13 : vector<8x128xf32>
    %cst_6 = arith.constant dense<0.000000e+00> : vector<8x128xf32>
    %15 = vector.multi_reduction <add>, %12, %cst_6 [0] : vector<1x8x128xf32> to vector<8x128xf32>
    %16 = arith.addf %1, %15 : vector<8x128xf32>
    %c0_7 = arith.constant 0 : index
    %c0_8 = arith.constant 0 : index
    %c0_9 = arith.constant 0 : index
    %c0_10 = arith.constant 0 : index
    %17 = vector.load %arg3[%c0_7, %c0_8, %c0_9, %c0_10] : memref<1x2x8x128xf32, #tpu.memory_space<vmem>>, vector<1x1x8x128xf32>
    %18 = vector.shape_cast %17 : vector<1x1x8x128xf32> to vector<8x128xf32>
    %19 = vector.shape_cast %14 : vector<8x128xf32> to vector<1x1x8x128xf32>
    tpu.vector_store %arg3[%c0_7, %c0_8, %c0_9, %c0_10], %19 {strides = array<i32>} : memref<1x2x8x128xf32, #tpu.memory_space<vmem>>, vector<1x1x8x128xf32>,
    %c0_11 = arith.constant 0 : index
    %c1 = arith.constant 1 : index
    %c0_12 = arith.constant 0 : index
    %c0_13 = arith.constant 0 : index
    %20 = vector.load %arg3[%c0_11, %c1, %c0_12, %c0_13] : memref<1x2x8x128xf32, #tpu.memory_space<vmem>>, vector<1x1x8x128xf32>
    %21 = vector.shape_cast %20 : vector<1x1x8x128xf32> to vector<8x128xf32>
    %22 = vector.shape_cast %16 : vector<8x128xf32> to vector<1x1x8x128xf32>
    tpu.vector_store %arg3[%c0_11, %c1, %c0_12, %c0_13], %22 {strides = array<i32>} : memref<1x2x8x128xf32, #tpu.memory_space<vmem>>, vector<1x1x8x128xf32>,
    return
  }
  func.func @transform_0(%arg0: i32) -> (i32, i32) {
    %c0_i32 = arith.constant 0 : i32
    %c0_i32_0 = arith.constant 0 : i32
    return %arg0, %c0_i32 : i32, i32
  }
  func.func @transform_1(%arg0: i32) -> (i32, i32) {
    %c0_i32 = arith.constant 0 : i32
    %c0_i32_0 = arith.constant 0 : i32
    return %arg0, %c0_i32 : i32, i32
  }
  func.func @transform_2(%arg0: i32) -> (i32, i32, i32, i32) {
    %c0_i32 = arith.constant 0 : i32
    %c0_i32_0 = arith.constant 0 : i32
    %c0_i32_1 = arith.constant 0 : i32
    %c0_i32_2 = arith.constant 0 : i32
    return %arg0, %c0_i32, %c0_i32_0, %c0_i32_1 : i32, i32, i32, i32
  }
}

</mosaic_0001>

<bundles_post_ra>
// kernel: tpu_custom_call.1
= control target key start
LH: loop header
LB: loop body
LE: loop exit
PB: predicated region body
PF: predicated region fallthrough
CT: control target
= control target key end

     0   :  { %7 = vsyncpa [#allocation3], 0  ;;  %s763_s0 = inlined_call_operand.hbm [shape: f32[16,128], index: 0, kind: input, shape index: {}]   ;;  %s764_s1 = inlined_call_operand.hbm [shape: f32[16,128], index: 1, kind: input, shape index: {}]   ;;  %s765_s2 = inlined_call_operand.hbm [shape: f32[2,2,8,128], index: 2, kind: output, shape index: {}]  }
   0x1   :  { %9 = vsyncpa [#allocation3 + $0x1], 0 }
   0x2   :  { %10 = vsyncpa [#allocation6], 0 }
   0x3   :  { %12 = vsyncpa [#allocation6 + $0x1], 0 }
   0x4   :  { %13 = vsyncpa [#allocation4], 0 }
   0x5   :  { %15 = vsyncpa [#allocation4 + $0x1], 0  ;;  %s551_s9 = smov 0   ;;  %s553_s10 = smov 0  }
   0x6   :  { %s555_s11 = smov 0   ;;  %s557_s12 = smov 0  }
   0x7 LB: > { %s572_s13 = sadd.s32 4294967295, %s529_s12   ;;  %s323_s14 = sadd.s32 4294967294, %s529_s12   ;;  %s529_s12 = sphi %s557_s12, %s784_s12   ;;  %s525_s11 = sphi %s555_s11, %s783_s11   ;;  %s521_s10 = sphi %s553_s10, %s782_s10   ;;  %s517_s9 = sphi %s551_s9, %s781_s9  }
   0x8   : > { %s576_s15 = sadd.s32 1, %s529_s12   ;;  %s28_s16 = sadd.s32 1, %s525_s11 }
   0x9   : > { %s25_s17 = ssub.s32 %s529_s12, %s576_s15  ;;  %p35_p0 = scmp.ne.s32.totalorder %s525_s11, %s521_s10 }
   0xa   : > { %p26_p1 = scmp.eq.s32.totalorder %s25_s17, 0  ;;  %p36_p2 = scmp.eq.s32.totalorder %s529_s12, 0 }
   0xb   : > { %p41_p3 = scmp.ne.s32.totalorder %s521_s10, %s517_s9  ;;  %p42_p4 = scmp.eq.s32.totalorder %s572_s13, 0 }
   0xc   : > { %s588_s18 = scalar_select %p26_p1, %s525_s11, %s28_s16  }
   0xd   : > { %p590_p5 = por %p36_p2, %p35_p0  ;;  %p594_p6 = por %p42_p4, %p41_p3 }
   0xe   : > { %p91_p7 = scmp.eq.s32.totalorder %s572_s13, 1  ;;  %p97_p8 = scmp.eq.s32.totalorder %s323_s14, 1 }
   0xf   : > { %s769_s20 = scalar_select %p594_p6, 1, 0 }
  0x10   : > { %p359_p10 = scmp.lt.s32.totalorder %s529_s12, 2  ;;  %p601_p11 = por %p91_p7, %p35_p0 }
  0x11   : > { %p605_p12 = por %p97_p8, %p41_p3  ;;  %s610_s23 = sand.u32 1, %s525_s11  }
  0x12   : > { %s770_s21 = scalar_select %p601_p11, 1, 0 }
  0x13   : > { %s771_s22 = scalar_select %p605_p12, 1, 0 }
  0x14   : > { %s327_s24 = sshll.u32 %s529_s12, 7  ;;  %s326_s25 = sshll.u32 %s610_s23, 3 }
  0x15   : > { %s619_s28 = scalar_lea.hbm %s763_s0, %s327_s24  ;;  %s121_s29 = scalar_lea.vmem [#allocation2], %s326_s25 }
  0x16   : > { %s128_s30 = sshll.u32 %s121_s29, 4  ;;  %p625_p13 = pnand %p359_p10, %p590_p5  ;;  %s629_s30 = int_to_ptr.vmem [resolvable:$true] %s128_s30 }
  0x17   : > { %s118_s4 = scalar_lea.sflag [#allocation3], %s610_s23  ;;  %s399_s5 = scalar_lea.hbm %s619_s28, 128 }
  0x18   : > { %p400_p2 = scmp.ne.s32.totalorder %s619_s28, %s399_s5  ;;  %p401_p3 = pneg %p625_p13 }
  0x19   : > { %s404_s8 = scalar_lea.hbm %s763_s0, 256  ;;  %p405_p5 = scmp.lt.u32.totalorder %s619_s28, %s763_s0 }
  0x1a   : > { %p402_p4 = pnand %p401_p3, %p400_p2  ;;  %p406_p8 = scmp.lt.u32.totalorder %s404_s8, %s399_s5 }
  0x1b   : > { %p408_p9 = scmp.lt.u32.totalorder %s399_s5, %s619_s28 }
  0x1c   : > { %p403_p7 = pneg %p402_p4  ;;  %p407_p10 = por %p406_p8, %p405_p5 }
  0x1e   : > { %p409_p0 = por %p408_p9, %p407_p10 }
  0x20   : > { %p410_p1 = pnand %p409_p0, %p403_p7 }
  0x22   : > { %413 = shalt.err (!%p410_p1)
}
  0x23   : > { %s414_s17 = scalar_lea.vmem %s629_s30, 128  ;;  %s531_s19 = smov [#allocation2]  }
  0x24   : > { %p415_p2 = scmp.ne.s32.totalorder %s629_s30, %s414_s17  ;;  %s419_s26 = sshll.u32 %s531_s19, 4  ;;  %s420_s26 = int_to_ptr.vmem [resolvable:$false] %s419_s26 }
  0x25   : > { %s421_s27 = scalar_lea.vmem %s420_s26, 256  ;;  %p422_p11 = scmp.lt.s32.totalorder %s629_s30, %s420_s26 }
  0x26   : > { %p417_p4 = pnand %p415_p2, %p401_p3  ;;  %p423_p5 = scmp.lt.s32.totalorder %s421_s27, %s414_s17 }
  0x28   : > { %p418_p12 = pneg %p417_p4  ;;  %p424_p8 = por %p423_p5, %p422_p11 }
  0x2a   : > { %p425_p9 = pnand %p424_p8, %p418_p12 }
  0x2c   : > { %428 = shalt.err (!%p425_p9)
}
  0x2d   : > { %351 = dma.hbm_to_vmem [thread:$0]  (!%p625_p13), %s619_s28, 128, %s629_s30, %s118_s4  }
  0x2e   : > { %p773_p0 = scmp.lt.s32.totalorder %s529_s12, 3  ;;  %p774_p1 = scmp.ge.s32.totalorder %s529_s12, 1 }
  0x2f   : > { %s672_s7 = scalar_lea.hbm %s764_s1, %s327_s24  ;;  %s139_s8 = scalar_lea.vmem [#allocation5], %s326_s25 }
  0x30   : > { %p663_p7 = pnand %p774_p1, %p773_p0  ;;  %s146_s14 = sshll.u32 %s139_s8, 4  ;;  %s147_s14 = int_to_ptr.vmem [resolvable:$true] %s146_s14 }
  0x31   : > { %s136_s28 = scalar_lea.sflag [#allocation6], %s610_s23  ;;  %s429_s30 = scalar_lea.hbm %s672_s7, 128 }
  0x32   : > { %s775_s29 = scalar_select %p663_p7, 1, 0 }
  0x33   : > { %p430_p11 = scmp.ne.s32.totalorder %s672_s7, %s429_s30  ;;  %s434_s24 = scalar_lea.hbm %s764_s1, 256 }
  0x34   : > { %p435_p2 = scmp.lt.u32.totalorder %s672_s7, %s764_s1  ;;  %p436_p4 = scmp.lt.u32.totalorder %s434_s24, %s429_s30 }
  0x35   : > { %p432_p12 = pnand %p430_p11, %p401_p3  ;;  %p438_p8 = scmp.lt.u32.totalorder %s429_s30, %s672_s7 }
  0x36   : > { %p437_p5 = por %p436_p4, %p435_p2 }
  0x37   : > { %p433_p10 = pneg %p432_p12 }
  0x38   : > { %p439_p9 = por %p438_p8, %p437_p5 }
  0x3a   : > { %p440_p0 = pnand %p439_p9, %p433_p10 }
  0x3c   : > { %443 = shalt.err (!%p440_p0)
}
  0x3d   : > { %s444_s23 = scalar_lea.vmem %s147_s14, 128  ;;  %s532_s25 = smov [#allocation5]  }
  0x3e   : > { %p445_p1 = scmp.ne.s32.totalorder %s147_s14, %s444_s23  ;;  %s449_s26 = sshll.u32 %s532_s25, 4  ;;  %s450_s26 = int_to_ptr.vmem [resolvable:$false] %s449_s26 }
  0x3f   : > { %s451_s27 = scalar_lea.vmem %s450_s26, 256  ;;  %p452_p6 = scmp.lt.s32.totalorder %s147_s14, %s450_s26 }
  0x40   : > { %p447_p11 = pnand %p445_p1, %p401_p3  ;;  %p453_p7 = scmp.lt.s32.totalorder %s451_s27, %s444_s23 }
  0x42   : > { %p448_p12 = pneg %p447_p11  ;;  %p454_p2 = por %p453_p7, %p452_p6 }
  0x44   : > { %p455_p4 = pnand %p454_p2, %p448_p12 }
  0x46   : > { %458 = shalt.err (!%p455_p4)
}
  0x47   : > { %354 = dma.hbm_to_vmem [thread:$0]  (!%p625_p13), %s672_s7, 128, %s147_s14, %s136_s28  }
  0x48   : > { %p776_p10 = scmp.ne.s32.totalorder %s775_s29, 0 }
  0x49   : > { %s699_s5 = sand.u32 (!%p776_p10), 1, %s521_s10   ;;  %p777_p3 = scmp.ne.s32.totalorder (!%p776_p10), %s769_s20, 0 }
  0x4a   : > { %155 = sbr.rel (%p776_p10) target bundleno = 128 (0x80), region = 28  ;;  %s331_s6 = sshll.u32 (!%p776_p10), %s699_s5, 3 }
  0x4b   : > { %s158_s8 = scalar_lea.sflag (!%p776_p10), [#allocation3], %s699_s5  ;;  %s161_s30 = scalar_lea.vmem (!%p776_p10), [#allocation2], %s331_s6 }
  0x51   : > { %504 = dma.done.wait (%p777_p3), %s158_s8, 128  }
  0x52   : > { %506 = vsyncadd (%p777_p3), %s158_s8, 4294967168  ;;  %s167_s3 = scalar_lea.sflag [#allocation6], %s699_s5  ;;  %s170_s7 = scalar_lea.vmem [#allocation5], %s331_s6 }
  0x53   : > { %508 = dma.done.wait (%p777_p3), %s167_s3, 128  }
  0x54   : > { %510 = vsyncadd (%p777_p3), %s167_s3, 4294967168  ;;  %v196_v0 = vld [vmem:[%s161_s30] sm:$0xff]  ;;  %s333_s29 = sshll.u32 %s699_s5, 4  ;;  %s341_s4 = sshll.u32 %s572_s13, 8  ;;  %v197_v4 = vld [vmem:[%s170_s7] sm:$0xff] }
  0x55   : > { %v334_v1 = vmul.f32 -1.442695, %v196_v0  ;;  %s195_s14 = scalar_lea.vmem [#allocation7], %s333_s29  ;;  %s719_s24 = scalar_lea.hbm %s765_s2, %s341_s4 }
  0x56   : > { %s227_s28 = sshll.u32 %s195_s14, 4  ;;  %s214_s17 = scalar_lea.sflag [#allocation4], %s699_s5  ;;  %s714_s28 = int_to_ptr.vmem [resolvable:$true] %s227_s28 }
  0x57   : > { %395 = vpow2.f32 %v334_v1  ;;  %s459_s19 = scalar_lea.vmem %s714_s28, 256  ;;  %p778_p13 = scmp.ne.s32.totalorder %s770_s21, 0 }
  0x58   : > { %p460_p6 = scmp.ne.s32.totalorder %s714_s28, %s459_s19  ;;  %s533_s13 = smov [#allocation7]  }
  0x59   : > { %s463_s23 = sshll.u32 %s533_s13, 4  ;;  %s464_s23 = int_to_ptr.vmem [resolvable:$false] %s463_s23 }
  0x5a   : > { %p461_p7 = pnand %p460_p6, %p778_p13  ;;  %s465_s25 = scalar_lea.vmem %s464_s23, 512 }
  0x5b   : > { %p466_p8 = scmp.lt.s32.totalorder %s714_s28, %s464_s23  ;;  %p467_p9 = scmp.lt.s32.totalorder %s465_s25, %s459_s19 }
  0x5c   : > { %p462_p5 = pneg %p461_p7 }
  0x5d   : > { %p468_p0 = por %p467_p9, %p466_p8 }
  0x5f   : > { %p469_p1 = pnand %p468_p0, %p462_p5 }
  0x61   : > { %v396_v2 = vpop.eup %395 }
  0x62   : > { %v201_v3 = vadd.f32 1.0, %v396_v2 }
  0x64   : > { %397 = vrcp.f32 %v201_v3 }
  0x6e   : > { %v398_v5 = vpop.eup %397 }
  0x6f   : > { %v204_v6 = vmul.f32 %v398_v5, %v197_v4  ;;  %v205_v7 = vadd.f32 %v398_v5, %v197_v4 }
  0x71   : > { %210 = vst [vmem:[%s195_s14] sm:$0xff] %v204_v6  ;;  %335 = vst [vmem:[%s195_s14 + $0x8] sm:$0xff] %v205_v7 }
  0x72   : > { %472 = shalt.err (!%p469_p1)
}
  0x73   : > { %s473_s26 = scalar_lea.hbm %s719_s24, 256  ;;  %s477_s8 = scalar_lea.hbm %s765_s2, 512 }
  0x74   : > { %p474_p11 = scmp.ne.s32.totalorder %s719_s24, %s473_s26  ;;  %p478_p4 = scmp.lt.u32.totalorder %s719_s24, %s765_s2 }
  0x75   : > { %p479_p10 = scmp.lt.u32.totalorder %s477_s8, %s473_s26  ;;  %p481_p6 = scmp.lt.u32.totalorder %s473_s26, %s719_s24 }
  0x76   : > { %p475_p12 = pnand %p474_p11, %p778_p13 }
  0x77   : > { %p480_p3 = por %p479_p10, %p478_p4 }
  0x78   : > { %p476_p2 = pneg %p475_p12 }
  0x79   : > { %p482_p7 = por %p481_p6, %p480_p3 }
  0x7b   : > { %p483_p5 = pnand %p482_p7, %p476_p2 }
  0x7d   : > { %486 = shalt.err (!%p483_p5)
}
  0x7e   : > { %s534_s7 = smov 128   ;;  %s535_s29 = smov 8  }
  0x7f   : > { %346 = dma.vmem_to_hbm [thread:$0]  (%p778_p13), %s714_s28, 256, %s719_s24, %s214_s17, %s534_s7, %s534_s7, %s535_s29  }
  0x80 PF: > { %s242_s14 = sand.u32 1, %s517_s9   ;;  %p779_p8 = scmp.ne.s32.totalorder %s771_s22, 0 }
  0x81   : > { %p780_p9 = scmp.ge.s32.totalorder %s529_s12, 2  ;;  %s243_s4 = scalar_lea.sflag [#allocation4], %s242_s14 }
  0x83   : > { %p356_p0 = pnand %p780_p9, %p779_p8 }
  0x85   : > { %512 = dma.done.wait (!%p356_p0), %s243_s4, 256  }
  0x86   : > { %514 = vsyncadd (!%p356_p0), %s243_s4, 4294967040  ;;  %p18_p1 = scmp.ge.s32.totalorder %s576_s15, 4   ;;  %s781_s9 = smov %s521_s10 }
  0x87   : > { %s782_s10 = smov %s525_s11  ;;  %s783_s11 = smov %s588_s18 }
  0x88   : > { %s784_s12 = smov %s576_s15  ;;  %20 = sbr.rel (!%p18_p1) target bundleno = 7 (0x7), region = 87 }
  0x8f   :  { %248 = vsyncpa [#allocation3], 1 }
  0x90   :  { %250 = vsyncpa [#allocation3 + $0x1], 1 }
  0x91   :  { %251 = vsyncpa [#allocation6], 1 }
  0x92   :  { %253 = vsyncpa [#allocation6 + $0x1], 1 }
  0x93   :  { %254 = vsyncpa [#allocation4], 1 }
  0x94   :  { %256 = vsyncpa [#allocation4 + $0x1], 1 }

</bundles_post_ra>
